<compile_context>
chip_gen: v5e
topology: v5e:2x2
jax: 0.10.0
libtpu: 0.0.40
codegen_flags: <defaults>
</compile_context>

<pallas_src>
import jax
import jax.numpy as jnp
from jax.experimental import pallas as pl
from jax.experimental.pallas import tpu as pltpu

LANE = 128           # vreg lane width
MAX_TILE_ROWS = 2048 # 2048 x 128 f32 = 1 MiB per input tile (mem-bound sweet spot)


def _make_ips_kernel(tile_rows, n_valid, needs_mask):
    """Builds the per-tile kernel. tile_rows, n_valid, needs_mask are static."""
    groups = tile_rows // 8  # tile_rows is always a multiple of 8

    def kernel(o_ref, l_ref, p_ref, part_ref):
        # Cast per-tile in VMEM (keeps HBM traffic at the native input dtype).
        ov = o_ref[...].astype(jnp.float32)
        lv = l_ref[...].astype(jnp.float32)
        pv = p_ref[...].astype(jnp.float32)

        diff = ov - lv
        # Exact reciprocal keeps 1e-5 accuracy; kernel is HBM-bound so the
        # divide is hidden.  (pl.reciprocal(approx=True) would be free on the
        # EUP slot but loosens numerics.)
        w = diff * diff * (jnp.float32(1.0) / pv)

        if needs_mask:
            # Zero out elements of the (block-padded) ragged tail tile.
            base = pl.program_id(0) * (tile_rows * LANE)
            row = jax.lax.broadcasted_iota(jnp.int32, (tile_rows, LANE), 0)
            lane = jax.lax.broadcasted_iota(jnp.int32, (tile_rows, LANE), 1)
            idx = base + row * LANE + lane
            w = jnp.where(idx < n_valid, w, jnp.float32(0.0))

        # Reduce the (tile_rows, 128) tile to an (8, 128) vreg-shaped partial
        # sum: pure VPU adds, no cross-lane (XLU) work, no scalar store.
        part_ref[...] = jnp.sum(w.reshape(groups, 8, LANE), axis=0)

    return kernel


def ips_loss(output, label, ps):
    """Computes sum((output - label)^2 / ps) with a Pallas TPU kernel."""
    o = output.reshape(-1)
    l = label.reshape(-1)
    p = ps.reshape(-1)
    n = o.shape[0]

    # Lane padding only if n is not a multiple of 128 (rare; one copy).
    # TODO(synk): a fully copy-free path for non-128-aligned n would need a
    # 1-D manual-DMA layout; not worth it for this elementwise reduction.
    lane_pad = (-n) % LANE
    if lane_pad:
        o = jnp.concatenate([o, jnp.zeros((lane_pad,), o.dtype)])
        l = jnp.concatenate([l, jnp.zeros((lane_pad,), l.dtype)])
        p = jnp.concatenate([p, jnp.ones((lane_pad,), p.dtype)])
    rows = (n + lane_pad) // LANE

    if rows >= MAX_TILE_ROWS:
        tile_rows = MAX_TILE_ROWS
    else:
        # Small input: one block covering all rows, rounded up to a sublane
        # multiple.  The arrays here are tiny (< 1 MiB) so padding is cheap.
        tile_rows = ((rows + 7) // 8) * 8
        row_pad = tile_rows - rows
        if row_pad:
            o = jnp.concatenate([o, jnp.zeros((row_pad * LANE,), o.dtype)])
            l = jnp.concatenate([l, jnp.zeros((row_pad * LANE,), l.dtype)])
            p = jnp.concatenate([p, jnp.ones((row_pad * LANE,), p.dtype)])
            rows = tile_rows

    o2 = o.reshape(rows, LANE)
    l2 = l.reshape(rows, LANE)
    p2 = p.reshape(rows, LANE)

    grid = pl.cdiv(rows, tile_rows)
    needs_mask = (grid * tile_rows != rows)  # ragged last block only

    kernel = _make_ips_kernel(tile_rows, n, needs_mask)

    in_spec = pl.BlockSpec((tile_rows, LANE), lambda i: (i, 0))
    out_spec = pl.BlockSpec((8, LANE), lambda i: (i, 0))

    in_bytes = n * (o.dtype.itemsize + l.dtype.itemsize + p.dtype.itemsize)
    cost = pl.CostEstimate(
        flops=5 * n,
        transcendentals=0,
        bytes_accessed=in_bytes + grid * 8 * LANE * 4,
    )

    partials = pl.pallas_call(
        kernel,
        out_shape=jax.ShapeDtypeStruct((grid * 8, LANE), jnp.float32),
        grid=(grid,),
        in_specs=[in_spec, in_spec, in_spec],
        out_specs=out_spec,
        compiler_params=pltpu.CompilerParams(
            # Each step writes its own output block -> fully parallel grid
            # (megacore sharding on v7x; neutral on v5e/v6e).
            dimension_semantics=("parallel",),
            vmem_limit_bytes=32 * 1024 * 1024,
        ),
        cost_estimate=cost,
    )(o2, l2, p2)

    # Tiny final reduction over per-block (8, 128) partial sums.
    return jnp.sum(partials)


if __name__ == "__main__":
    key = jax.random.PRNGKey(0)
    k1, k2, k3 = jax.random.split(key, 3)

    # Small NCHW-shaped inputs consistent with the module's forward.
    shape = (2, 4, 16, 16)
    output = jax.random.normal(k1, shape, dtype=jnp.float32)
    label = jax.random.normal(k2, shape, dtype=jnp.float32)
    # Propensity scores strictly positive.
    ps = jax.random.uniform(k3, shape, dtype=jnp.float32, minval=0.1, maxval=1.0)

    loss = ips_loss(output, label, ps)
    jax.block_until_ready(loss)

    # Reference check (pure JAX).
    ref = jnp.sum((output - label) ** 2 * (1.0 / ps))
    assert jnp.allclose(loss, ref, rtol=1e-5, atol=1e-5), (loss, ref)

    print("KERNEL_OK")
</pallas_src>

<mosaic_0001>
module attributes {stable_mosaic.version = 11 : i64} {
  func.func @kernel(%arg0: i32, %arg1: memref<16x128xf32, #tpu.memory_space<vmem>>, %arg2: memref<16x128xf32, #tpu.memory_space<vmem>>, %arg3: memref<16x128xf32, #tpu.memory_space<vmem>>, %arg4: memref<8x128xf32, #tpu.memory_space<vmem>>) attributes {dimension_semantics = [#tpu.dimension_semantics<parallel>], iteration_bounds = array<i64: 1>, scalar_prefetch = 0 : i64, scratch_operands = 0 : i64, tpu.core_type = #tpu.core_type<tc>, window_params = [{transform_indices = @transform_0, window_bounds = array<i64: 16, 128>}, {transform_indices = @transform_1, window_bounds = array<i64: 16, 128>}, {transform_indices = @transform_2, window_bounds = array<i64: 16, 128>}, {transform_indices = @transform_3, window_bounds = array<i64: 8, 128>}]} {
    %c0 = arith.constant 0 : index
    %c0_0 = arith.constant 0 : index
    %0 = vector.load %arg1[%c0, %c0_0] : memref<16x128xf32, #tpu.memory_space<vmem>>, vector<16x128xf32>
    %c0_1 = arith.constant 0 : index
    %c0_2 = arith.constant 0 : index
    %1 = vector.load %arg2[%c0_1, %c0_2] : memref<16x128xf32, #tpu.memory_space<vmem>>, vector<16x128xf32>
    %c0_3 = arith.constant 0 : index
    %c0_4 = arith.constant 0 : index
    %2 = vector.load %arg3[%c0_3, %c0_4] : memref<16x128xf32, #tpu.memory_space<vmem>>, vector<16x128xf32>
    %3 = arith.subf %0, %1 : vector<16x128xf32>
    %4 = arith.mulf %3, %3 : vector<16x128xf32>
    %cst = arith.constant 1.000000e+00 : f32
    %5 = vector.broadcast %cst : f32 to vector<16x128xf32>
    %6 = arith.divf %5, %2 : vector<16x128xf32>
    %7 = arith.mulf %4, %6 : vector<16x128xf32>
    %8 = vector.shape_cast %7 : vector<16x128xf32> to vector<2x8x128xf32>
    %cst_5 = arith.constant dense<0.000000e+00> : vector<8x128xf32>
    %9 = vector.multi_reduction <add>, %8, %cst_5 [0] : vector<2x8x128xf32> to vector<8x128xf32>
    %c0_6 = arith.constant 0 : index
    %c0_7 = arith.constant 0 : index
    %10 = vector.load %arg4[%c0_6, %c0_7] : memref<8x128xf32, #tpu.memory_space<vmem>>, vector<8x128xf32>
    tpu.vector_store %arg4[%c0_6, %c0_7], %9 {strides = array<i32>} : memref<8x128xf32, #tpu.memory_space<vmem>>, vector<8x128xf32>,
    return
  }
  func.func @transform_0(%arg0: i32) -> (i32, i32) {
    %c0_i32 = arith.constant 0 : i32
    %c0_i32_0 = arith.constant 0 : i32
    return %arg0, %c0_i32 : i32, i32
  }
  func.func @transform_1(%arg0: i32) -> (i32, i32) {
    %c0_i32 = arith.constant 0 : i32
    %c0_i32_0 = arith.constant 0 : i32
    return %arg0, %c0_i32 : i32, i32
  }
  func.func @transform_2(%arg0: i32) -> (i32, i32) {
    %c0_i32 = arith.constant 0 : i32
    %c0_i32_0 = arith.constant 0 : i32
    return %arg0, %c0_i32 : i32, i32
  }
  func.func @transform_3(%arg0: i32) -> (i32, i32) {
    %c0_i32 = arith.constant 0 : i32
    %c0_i32_0 = arith.constant 0 : i32
    return %arg0, %c0_i32 : i32, i32
  }
}

</mosaic_0001>

<bundles_post_ra>
// kernel: tpu_custom_call.1
= control target key start
LH: loop header
LB: loop body
LE: loop exit
PB: predicated region body
PF: predicated region fallthrough
CT: control target
= control target key end

     0   :  { %8 = vsyncpa [#allocation3], 0  ;;  %s274_s0 = inlined_call_operand.hbm [shape: f32[16,128], index: 0, kind: input, shape index: {}]   ;;  %s275_s1 = inlined_call_operand.hbm [shape: f32[16,128], index: 1, kind: input, shape index: {}]   ;;  %s276_s2 = inlined_call_operand.hbm [shape: f32[16,128], index: 2, kind: input, shape index: {}]   ;;  %s277_s3 = inlined_call_operand.hbm [shape: f32[8,128], index: 3, kind: output, shape index: {}]  }
   0x1   :  { %9 = vsyncpa [#allocation6], 0 }
   0x2   :  { %10 = vsyncpa [#allocation4], 0  ;;  %s28_s14 = sshll.u32 %s275_s1, 4  ;;  %s236_s15 = smov [#allocation5]   ;;  %s29_s14 = int_to_ptr.hbm [resolvable:$true] %s28_s14 }
   0x3   :  { %s30_s16 = sshll.u32 %s236_s15, 4  ;;  %s15_s19 = sshll.u32 %s274_s0, 4  ;;  %s31_s16 = int_to_ptr.vmem [resolvable:$true] %s30_s16  ;;  %s16_s19 = int_to_ptr.hbm [resolvable:$true] %s15_s19 }
   0x4   :  { %s237_s20 = smov 128   ;;  %s238_s21 = smov 8  }
   0x5   :  { %36 = dma.hbm_to_vmem [thread:$0]  %s29_s14, 256, %s31_s16, [#allocation6], %s237_s20, %s237_s20, %s238_s21  }
   0x6   :  { %s239_s22 = smov [#allocation2]   ;;  %s41_s26 = sshll.u32 %s276_s2, 4  ;;  %s42_s26 = int_to_ptr.hbm [resolvable:$true] %s41_s26 }
   0x7   :  { %s17_s23 = sshll.u32 %s239_s22, 4  ;;  %s240_s1 = smov [#allocation7]   ;;  %s18_s23 = int_to_ptr.vmem [resolvable:$true] %s17_s23 }
   0x8   :  { %23 = dma.hbm_to_vmem [thread:$0]  %s16_s19, 256, %s18_s23, [#allocation3], %s237_s20, %s237_s20, %s238_s21  }
   0x9   :  { %s43_s27 = sshll.u32 %s240_s1, 4  ;;  %s44_s27 = int_to_ptr.vmem [resolvable:$true] %s43_s27 }
   0xa   :  { %49 = dma.hbm_to_vmem [thread:$0]  %s42_s26, 256, %s44_s27, [#allocation6], %s237_s20, %s237_s20, %s238_s21  }
   0xb   :  { %230 = dma.done.wait [#allocation3], 256  }
   0xc   :  { %231 = vsyncadd [#allocation3], 4294967040 }
   0xd   :  { %232 = dma.done.wait [#allocation6], 512  }
   0xe   :  { %233 = vsyncadd [#allocation6], 4294966784  ;;  %v66_v0 = vld [vmem:[#allocation7] sm:$0xff]  ;;  %v67_v1 = vld [vmem:[#allocation7 + $0x8] sm:$0xff]  ;;  %s241_s0 = smov [#allocation8]   ;;  %s113_s30 = sshll.u32 %s277_s3, 4  ;;  %s114_s30 = int_to_ptr.hbm [resolvable:$true] %s113_s30 }
   0xf   :  { %130 = vrcp.f32 %v66_v0  ;;  %v62_v2 = vld [vmem:[#allocation2] sm:$0xff]  ;;  %v64_v3 = vld [vmem:[#allocation5] sm:$0xff]  ;;  %v63_v4 = vld [vmem:[#allocation2 + $0x8] sm:$0xff]  ;;  %vm77_vm0 = vweird.f32 %v66_v0  ;;  %v83_v11 = vand.u32 2147483648, %v66_v0  ;;  %v81_v14 = vand.u32 2147483647, %v66_v0 }
  0x10   :  { %132 = vrcp.f32 %v67_v1  ;;  %v65_v5 = vld [vmem:[#allocation5 + $0x8] sm:$0xff]  ;;  %v68_v8 = vsub.f32 %v62_v2, %v64_v3  ;;  %v98_v15 = vand.u32 2147483648, %v67_v1  ;;  %vm92_vm2 = vweird.f32 %v67_v1  ;;  %s111_s2 = sshll.u32 %s241_s0, 4  ;;  %s112_s2 = int_to_ptr.vmem [resolvable:$true] %s111_s2 }
  0x11   :  { %v69_v10 = vsub.f32 %v63_v4, %v65_v5  ;;  %v96_v17 = vand.u32 2147483647, %v67_v1  ;;  %v84_v19 = vor.u32 1.1754944e-38, %v83_v11  ;;  %vm82_vm5 = vcmp.eq.f32.partialorder %v81_v14, 8.507059e+37 }
  0x12   :  { %v70_v21 = vmul.f32 %v68_v8, %v68_v8  ;;  %v99_v23 = vor.u32 1.1754944e-38, %v98_v15 }
  0x13   :  { %v71_v24 = vmul.f32 %v69_v10, %v69_v10  ;;  %vm97_vm7 = vcmp.eq.f32.partialorder %v96_v17, 8.507059e+37 }
  0x15   :  { %v131_v6 = vpop.eup %130 }
  0x16   :  { %v133_v7 = vpop.eup %132  ;;  %v73_v9 = vmul.f32 %v131_v6, %v66_v0  ;;  %vm78_vm1 = vweird.f32 %v131_v6 }
  0x17   :  { %v88_v12 = vmul.f32 %v133_v7, %v67_v1  ;;  %vm93_vm3 = vweird.f32 %v133_v7  ;;  %vm79_vm4 = vmor %vm77_vm0, %vm78_vm1 }
  0x18   :  { %v74_v13 = vsub.f32 1.0, %v73_v9  ;;  %vm94_vm6 = vmor %vm92_vm2, %vm93_vm3 }
  0x19   :  { %v89_v16 = vsub.f32 1.0, %v88_v12 }
  0x1a   :  { %v75_v18 = vmul.f32 %v131_v6, %v74_v13 }
  0x1b   :  { %v90_v20 = vmul.f32 %v133_v7, %v89_v16 }
  0x1c   :  { %v76_v22 = vadd.f32 %v131_v6, %v75_v18 }
  0x1d   :  { %v91_v25 = vadd.f32 %v133_v7, %v90_v20 }
  0x1e   :  { %v80_v26 = vsel %vm79_vm4, %v131_v6, %v76_v22 }
  0x1f   :  { %v85_v27 = vsel %vm82_vm5, %v84_v19, %v80_v26  ;;  %v95_v28 = vsel %vm94_vm6, %v133_v7, %v91_v25 }
  0x20   :  { %v100_v29 = vsel %vm97_vm7, %v99_v23, %v95_v28  ;;  %v102_v30 = vmul.f32 %v85_v27, %v70_v21 }
  0x21   :  { %v103_v31 = vmul.f32 %v100_v29, %v71_v24 }
  0x23   :  { %v104_v32 = vadd.f32 %v103_v31, %v102_v30 }
  0x25   :  { %105 = vst [vmem:[#allocation8] sm:$0xff] %v104_v32 }
  0x26   :  { %116 = dma.vmem_to_hbm [thread:$0]  %s112_s2, 128, %s114_s30, [#allocation4]  }
  0x27   :  { %234 = dma.done.wait [#allocation4], 128  }
  0x28   :  { %235 = vsyncadd [#allocation4], 4294967168 }
  0x29   :  { %121 = vsyncpa [#allocation3], 1 }
  0x2a   :  { %122 = vsyncpa [#allocation6], 1 }
  0x2b   :  { %123 = vsyncpa [#allocation4], 1 }

</bundles_post_ra>
